<compile_context>
chip_gen: v6e
topology: v6e:2x2x1
jax: 0.10.0
libtpu: 0.0.40
codegen_flags: <defaults>
</compile_context>

<pallas_src>
import jax
import jax.numpy as jnp
from jax.experimental import pallas as pl
from jax.experimental.pallas import tpu as pltpu


# ---------------------------------------------------------------------------
# Pallas kernel: one batch element per grid step, all channels fused.
# ---------------------------------------------------------------------------
def _grid_sample_kernel(x_ref, wxt_ref, wy_ref, o_ref):
    """x_ref: (1, C*H, W)   image, channels stacked along rows
    wxt_ref:  (1, W, T)     width-interp weights, pre-transposed
    wy_ref:   (1, T, H)     height-interp weights
    o_ref:    (1, T, C*T)   lane-dense slab: o[i, c*T + j] = out[c, i, j]
    """
    CH = x_ref.shape[1]
    T = wxt_ref.shape[2]
    H = wy_ref.shape[2]
    C = CH // H

    x = x_ref[0]        # (C*H, W)
    wxt = wxt_ref[0]    # (W, T)
    wy = wy_ref[0]      # (T, H)

    # Matmul 1 (all channels at once): tmp[c*H + h, j] = sum_w x[c,h,w]*wxt[w,j]
    tmp = jnp.dot(x, wxt, preferred_element_type=jnp.float32)          # (C*H, T)

    # Rearrange (C, H, T) -> (H, C*T): aligned static row-slices (H % 8 == 0)
    # concatenated along the lane axis.  Cheap XLU/VPU work under MXU slack.
    tmp_hct = jnp.concatenate(
        [tmp[c * H:(c + 1) * H, :] for c in range(C)], axis=1)          # (H, C*T)

    # Matmul 2 (all channels at once): out[i, c*T + j] = sum_h wy[i,h]*tmp[c,h,j]
    out = jnp.dot(wy, tmp_hct, preferred_element_type=jnp.float32)      # (T, C*T)
    o_ref[0] = out.astype(o_ref.dtype)


def _pallas_grid_sample(x, wxt, wy):
    """x: (B, C, H, W); wxt: (B, W, T); wy: (B, T, H) -> (B, C, T, T)."""
    B, C, H, W = x.shape
    T = wxt.shape[2]
    # Free layout plumbing: NCHW is contiguous, so this reshape is metadata only.
    x2 = x.reshape(B, C * H, W)
    out_slab = pl.pallas_call(
        _grid_sample_kernel,
        out_shape=jax.ShapeDtypeStruct((B, T, C * T), x.dtype),
        grid_spec=pltpu.PrefetchScalarGridSpec(
            num_scalar_prefetch=0,
            grid=(B,),
            in_specs=[
                pl.BlockSpec((1, C * H, W), lambda b: (b, 0, 0)),
                pl.BlockSpec((1, W, T), lambda b: (b, 0, 0)),
                pl.BlockSpec((1, T, H), lambda b: (b, 0, 0)),
            ],
            out_specs=pl.BlockSpec((1, T, C * T), lambda b: (b, 0, 0)),
        ),
        compiler_params=pltpu.CompilerParams(
            dimension_semantics=("parallel",),
        ),
    )(x2, wxt, wy)
    # (B, T, C*T) -> (B, C, T, T): lane-dense slab back to NCHW (wrapper-side).
    return out_slab.reshape(B, T, C, T).transpose(0, 2, 1, 3)


# ---------------------------------------------------------------------------
# Glue: build separable shifted/flipped grid coords and bilinear weight
# matrices (align_corners=True, padding_mode='zeros' semantics).
# ---------------------------------------------------------------------------
def _bilinear_weight_matrix(coords, size):
    """coords: (B, T) normalized grid coords -> (B, T, size) weight matrix.

    align_corners=True: pixel = (coord + 1) / 2 * (size - 1).
    Out-of-range neighbors contribute zero (zeros padding).
    """
    ix = (coords + 1.0) * 0.5 * (size - 1)
    x0 = jnp.floor(ix)
    w1 = ix - x0
    w0 = 1.0 - w1
    x0i = x0.astype(jnp.int32)
    x1i = x0i + 1
    idx = jnp.arange(size, dtype=jnp.int32)[None, None, :]              # (1,1,size)
    m0 = (idx == x0i[..., None]).astype(coords.dtype)
    m1 = (idx == x1i[..., None]).astype(coords.dtype)
    return m0 * w0[..., None] + m1 * w1[..., None]                       # (B,T,size)


class RandomTransformPallas:
    def __init__(self, source_size, target_size, shift=8, fliplr=True,
                 flipud=False, mode="bilinear", align=True):
        assert mode == "bilinear" and align, "only bilinear + align_corners=True"
        self.source_size = source_size
        self.target_size = target_size
        # torch.linspace(0, 1, source_size)[shift] == shift / (source_size - 1)
        self.delta = shift / float(source_size - 1)
        self.fliplr = fliplr
        self.flipud = flipud
        k = float(target_size) / float(source_size)
        # 1-D base grid (separable): identical for x (width) and y (height).
        self.lin = jnp.linspace(-1.0, k, target_size, dtype=jnp.float32)

    def grid_coords(self, randgen, dtype):
        """Return per-batch (gx, gy) grid coordinates, shape (B, T) each."""
        lin = self.lin.astype(dtype)
        x_shift = (randgen[:, 0:1] - 0.5) * 2.0 * self.delta             # (B,1)
        y_shift = (randgen[:, 1:2] - 0.5) * 2.0 * self.delta             # (B,1)
        gx = lin[None, :] + x_shift                                       # (B,T)
        gy = lin[None, :] + y_shift                                       # (B,T)
        if self.fliplr:
            gx = jnp.where(randgen[:, 2:3] > 0.5, -gx, gx)
        if self.flipud:
            gy = jnp.where(randgen[:, 3:4] > 0.5, -gy, gy)
        return gx, gy

    def __call__(self, x, randgen):
        """x: (B, C, H, W) float32, randgen: (B, 4) uniform in [0, 1)."""
        B, C, H, W = x.shape
        gx, gy = self.grid_coords(randgen, x.dtype)
        wx = _bilinear_weight_matrix(gx, W)                               # (B,T,W)
        wy = _bilinear_weight_matrix(gy, H)                               # (B,T,H)
        wxt = jnp.swapaxes(wx, 1, 2)                                      # (B,W,T)
        return _pallas_grid_sample(x, wxt, wy)


if __name__ == "__main__":
    # Small shapes consistent with the module: 16x16 source images, 8x8 crop.
    B, C, S, T = 2, 4, 16, 8
    key = jax.random.PRNGKey(0)
    kx, kr = jax.random.split(key)
    x = jax.random.normal(kx, (B, C, S, S), dtype=jnp.float32)
    randgen = jax.random.uniform(kr, (B, 4), dtype=jnp.float32)

    transform = RandomTransformPallas(source_size=S, target_size=T, shift=8,
                                      fliplr=True, flipud=False,
                                      mode="bilinear", align=True)
    out = transform(x, randgen)
    out = jax.block_until_ready(out)

    # Pure-JAX reference of the same separable grid_sample for sanity.
    gx, gy = transform.grid_coords(randgen, x.dtype)
    wx_ref = _bilinear_weight_matrix(gx, S)
    wy_ref = _bilinear_weight_matrix(gy, S)
    ref = jnp.einsum("bih,bchw,bjw->bcij", wy_ref, x, wx_ref)
    assert out.shape == (B, C, T, T)
    assert jnp.allclose(out, ref, atol=1e-5, rtol=1e-5)
    print("KERNEL_OK")
</pallas_src>

<mosaic_0001>
module attributes {stable_mosaic.version = 11 : i64} {
  func.func @_grid_sample_kernel(%arg0: i32, %arg1: memref<1x64x16xf32, #tpu.memory_space<vmem>>, %arg2: memref<1x16x8xf32, #tpu.memory_space<vmem>>, %arg3: memref<1x8x16xf32, #tpu.memory_space<vmem>>, %arg4: memref<1x8x32xf32, #tpu.memory_space<vmem>>) attributes {dimension_semantics = [#tpu.dimension_semantics<parallel>], iteration_bounds = array<i64: 2>, scalar_prefetch = 0 : i64, scratch_operands = 0 : i64, tpu.core_type = #tpu.core_type<tc>, window_params = [{transform_indices = @transform_0, window_bounds = array<i64: 1, 64, 16>}, {transform_indices = @transform_1, window_bounds = array<i64: 1, 16, 8>}, {transform_indices = @transform_2, window_bounds = array<i64: 1, 8, 16>}, {transform_indices = @transform_3, window_bounds = array<i64: 1, 8, 32>}]} {
    %c0 = arith.constant 0 : index
    %c0_0 = arith.constant 0 : index
    %c0_1 = arith.constant 0 : index
    %0 = vector.load %arg1[%c0, %c0_0, %c0_1] : memref<1x64x16xf32, #tpu.memory_space<vmem>>, vector<1x64x16xf32>
    %1 = vector.shape_cast %0 : vector<1x64x16xf32> to vector<64x16xf32>
    %c0_2 = arith.constant 0 : index
    %c0_3 = arith.constant 0 : index
    %c0_4 = arith.constant 0 : index
    %2 = vector.load %arg2[%c0_2, %c0_3, %c0_4] : memref<1x16x8xf32, #tpu.memory_space<vmem>>, vector<1x16x8xf32>
    %3 = vector.shape_cast %2 : vector<1x16x8xf32> to vector<16x8xf32>
    %c0_5 = arith.constant 0 : index
    %c0_6 = arith.constant 0 : index
    %c0_7 = arith.constant 0 : index
    %4 = vector.load %arg3[%c0_5, %c0_6, %c0_7] : memref<1x8x16xf32, #tpu.memory_space<vmem>>, vector<1x8x16xf32>
    %5 = vector.shape_cast %4 : vector<1x8x16xf32> to vector<8x16xf32>
    %cst = arith.constant dense<0.000000e+00> : vector<64x8xf32>
    %6 = tpu.matmul %1, %3, %cst {dimension_numbers = #tpu.dot_dimension_numbers<[1], [0], [0], [1], [0, 0, 1, 1], [], []>} : vector<64x16xf32>, vector<16x8xf32>, vector<64x8xf32> -> vector<64x8xf32>
    %7 = vector.extract_strided_slice %6 {offsets = [0, 0], sizes = [16, 8], strides = [1, 1]} : vector<64x8xf32> to vector<16x8xf32>
    %8 = vector.extract_strided_slice %6 {offsets = [16, 0], sizes = [16, 8], strides = [1, 1]} : vector<64x8xf32> to vector<16x8xf32>
    %9 = vector.extract_strided_slice %6 {offsets = [32, 0], sizes = [16, 8], strides = [1, 1]} : vector<64x8xf32> to vector<16x8xf32>
    %10 = vector.extract_strided_slice %6 {offsets = [48, 0], sizes = [16, 8], strides = [1, 1]} : vector<64x8xf32> to vector<16x8xf32>
    %11 = tpu.concatenate %7, %8, %9, %10 in 1 : vector<16x8xf32>, vector<16x8xf32>, vector<16x8xf32>, vector<16x8xf32> -> vector<16x32xf32>
    %cst_8 = arith.constant dense<0.000000e+00> : vector<8x32xf32>
    %12 = tpu.matmul %5, %11, %cst_8 {dimension_numbers = #tpu.dot_dimension_numbers<[1], [0], [0], [1], [0, 0, 1, 1], [], []>} : vector<8x16xf32>, vector<16x32xf32>, vector<8x32xf32> -> vector<8x32xf32>
    %c0_9 = arith.constant 0 : index
    %c0_10 = arith.constant 0 : index
    %c0_11 = arith.constant 0 : index
    %13 = vector.load %arg4[%c0_9, %c0_10, %c0_11] : memref<1x8x32xf32, #tpu.memory_space<vmem>>, vector<1x8x32xf32>
    %14 = vector.shape_cast %13 : vector<1x8x32xf32> to vector<8x32xf32>
    %15 = vector.shape_cast %12 : vector<8x32xf32> to vector<1x8x32xf32>
    tpu.vector_store %arg4[%c0_9, %c0_10, %c0_11], %15 {strides = array<i32>} : memref<1x8x32xf32, #tpu.memory_space<vmem>>, vector<1x8x32xf32>,
    return
  }
  func.func @transform_0(%arg0: i32) -> (i32, i32, i32) {
    %c0_i32 = arith.constant 0 : i32
    %c0_i32_0 = arith.constant 0 : i32
    %c0_i32_1 = arith.constant 0 : i32
    return %arg0, %c0_i32, %c0_i32_0 : i32, i32, i32
  }
  func.func @transform_1(%arg0: i32) -> (i32, i32, i32) {
    %c0_i32 = arith.constant 0 : i32
    %c0_i32_0 = arith.constant 0 : i32
    %c0_i32_1 = arith.constant 0 : i32
    return %arg0, %c0_i32, %c0_i32_0 : i32, i32, i32
  }
  func.func @transform_2(%arg0: i32) -> (i32, i32, i32) {
    %c0_i32 = arith.constant 0 : i32
    %c0_i32_0 = arith.constant 0 : i32
    %c0_i32_1 = arith.constant 0 : i32
    return %arg0, %c0_i32, %c0_i32_0 : i32, i32, i32
  }
  func.func @transform_3(%arg0: i32) -> (i32, i32, i32) {
    %c0_i32 = arith.constant 0 : i32
    %c0_i32_0 = arith.constant 0 : i32
    %c0_i32_1 = arith.constant 0 : i32
    return %arg0, %c0_i32, %c0_i32_0 : i32, i32, i32
  }
}

</mosaic_0001>

<bundles_post_ra>
// kernel: tpu_custom_call.1
= control target key start
LH: loop header
LB: loop body
LE: loop exit
PB: predicated region body
PF: predicated region fallthrough
CT: control target
= control target key end

     0   :  { %8 = vsyncpa [#allocation3], 0  ;;  %s869_s0 = inlined_call_operand.vmem [shape: f32[2,64,16], index: 0, kind: input, shape index: {}]   ;;  %s870_s1 = inlined_call_operand.vmem [shape: f32[2,16,8], index: 1, kind: input, shape index: {}]   ;;  %s871_s2 = inlined_call_operand.vmem [shape: f32[2,8,16], index: 2, kind: input, shape index: {}]   ;;  %s872_s3 = inlined_call_operand.hbm [shape: f32[2,8,32], index: 3, kind: output, shape index: {}]  }
   0x1   :  { %10 = vsyncpa [#allocation3 + $0x1], 0  ;;  %s748_s12 = smov 0   ;;  %s750_s13 = smov 0  }
   0x2   :  { %s752_s14 = smov 0   ;;  %s754_s15 = smov 0  }
   0x3 LB: > { %s769_s16 = sadd.s32 4294967295, %s720_s15   ;;  %s551_s17 = sadd.s32 4294967294, %s720_s15   ;;  %s720_s15 = sphi %s754_s15, %s878_s15   ;;  %s716_s14 = sphi %s752_s14, %s877_s14   ;;  %s712_s13 = sphi %s750_s13, %s876_s13   ;;  %s708_s12 = sphi %s748_s12, %s875_s12  }
   0x4   : > { %s773_s18 = sadd.s32 1, %s720_s15   ;;  %s101_s19 = sadd.s32 1, %s716_s14 }
   0x5   : > { %s98_s20 = ssub.s32 %s720_s15, %s773_s18  ;;  %p111_p0 = scmp.ne.s32.totalorder %s716_s14, %s712_s13 }
   0x6   : > { %p99_p1 = scmp.eq.s32.totalorder %s98_s20, 0  ;;  %p112_p2 = scmp.eq.s32.totalorder %s769_s16, 1 }
   0x7   : > { %p117_p3 = scmp.ne.s32.totalorder %s712_s13, %s708_s12  ;;  %p118_p4 = scmp.eq.s32.totalorder %s551_s17, 1 }
   0x8   : > { %s784_s21 = scalar_select %p99_p1, %s716_s14, %s101_s19  }
   0x9   : > { %p786_p5 = por %p112_p2, %p111_p0  ;;  %p790_p6 = por %p118_p4, %p117_p3 }
   0xa   : > { %p554_p7 = scmp.ge.s32.totalorder %s720_s15, 1  ;;  %p159_p8 = scmp.lt.s32.totalorder %s720_s15, 3 }
   0xc   : > { %p160_p9 = pnand %p554_p7, %p159_p8 }
   0xd   : > { %p192_p10 = scmp.lt.s32.totalorder (!%p160_p9), %s769_s16, 1  ;;  %s724_s6 = smov (!%p160_p9), 24  }
   0xe   : > { %163 = sbr.rel (%p160_p9) target bundleno = 558 (0x22e), region = 32  ;;  %s725_s7 = smov (!%p160_p9), 8  }
   0xf   : > { %s726_s8 = smov (!%p160_p9), 16   ;;  %s189_s19 = sand.u32 (!%p160_p9), 1, %s712_s13  }
  0x10   : > { %s555_s20 = sshll.u32 (!%p160_p9), %s189_s19, 3  ;;  %s455_s30 = scalar_lea.sflag (!%p160_p9), [#allocation3], %s189_s19 }
  0x13   : > { %s798_s24 = scalar_select %p192_p10, %s769_s16, 1  ;;  %vm217_vm0 = vcmask 130048   ;;  %v722_v10 = vmov 0.0   ;;  %vm723_vm1 = vmmov 0   ;;  %vm371_vm2 = vcmask 64512  }
  0x14   : > { %vm376_vm3 = vcmask 195584   ;;  %vm452_vm4 = vcmask 261120  }
  0x15   : > { %s574_s25 = sshll.u32 %s798_s24, 6  ;;  %s575_s26 = sshll.u32 %s798_s24, 4 }
  0x16   : > { %s196_s29 = scalar_lea.vmem %s869_s0, %s574_s25  ;;  %s201_s5 = scalar_lea.vmem %s870_s1, %s575_s26 }
  0x17   : > { %v215_v0 = vld [vmem:[%s201_s5 + $0x8] sm:$0xff]  ;;  %v214_v1 = vld [vmem:[%s201_s5] sm:$0xff]  ;;  %v212_v4 = vld [vmem:[%s196_s29 + $0x30] sm:$0xff]  ;;  %s560_s9 = sshll.u32 %s798_s24, 3  ;;  %s571_s24 = sshll.u32 %s769_s16, 7 }
  0x18   : > { %v206_v2 = vld [vmem:[%s196_s29] sm:$0xff]  ;;  %589 = vmatprep.subr.mxu0 %v215_v0  ;;  %612 = vmatprep.subr.mxu1 %v215_v0  ;;  %v207_v3 = vld [vmem:[%s196_s29 + $0x8] sm:$0xff]  ;;  %v208_v5 = vld [vmem:[%s196_s29 + $0x10] sm:$0xff]  ;;  %s205_s17 = scalar_lea.vmem %s871_s2, %s560_s9  ;;  %s191_s25 = scalar_lea.vmem [#allocation2], %s555_s20 }
  0x19   : > { %590 = vmatpush3.msra.mxu0 %v215_v0  ;;  %614 = vmatpush3.msra.mxu1 %v215_v0  ;;  %v213_v6 = vld [vmem:[%s196_s29 + $0x38] sm:$0xff]  ;;  %v210_v8 = vld [vmem:[%s196_s29 + $0x20] sm:$0xff]  ;;  %v211_v9 = vld [vmem:[%s196_s29 + $0x28] sm:$0xff]  ;;  %s468_s26 = sshll.u32 %s191_s25, 4  ;;  %s727_s16 = smov [#allocation2]   ;;  %s830_s26 = int_to_ptr.vmem [resolvable:$true] %s468_s26 }
  0x1a   : > { %591 = vmatprep.subr.mxu0 %v214_v1  ;;  %593 = vmatprep.mubr.msk.f32.mxu0 %vm217_vm0, %v206_v2  ;;  %v209_v7 = vld [vmem:[%s196_s29 + $0x18] sm:$0xff]  ;;  %v216_v30 = vld [vmem:[%s205_s17] sm:$0xff]  ;;  %s828_s29 = scalar_lea.hbm %s872_s3, %s571_s24  ;;  %s660_s4 = scalar_lea.vmem %s830_s26, 128 }
  0x1b   : > { %592 = vmatpush3.msra.mxu0 %v214_v1  ;;  %613 = vmatprep.subr.mxu1 %v214_v1  ;;  %p661_p11 = scmp.ne.s32.totalorder %s830_s26, %s660_s4  ;;  %s664_s5 = sshll.u32 %s727_s16, 4  ;;  %s665_s5 = int_to_ptr.vmem [resolvable:$false] %s664_s5 }
  0x1c   : > { %594 = vmatmul.mubr.msk.f32.vlgmr.msra.gmra.mxu0 %vm217_vm0, %v207_v3  ;;  %615 = vmatpush3.msra.mxu1 %v214_v1  ;;  %p667_p0 = scmp.lt.s32.totalorder %s830_s26, %s665_s5 }
  0x1d   : > { %602 = vmatprep.mubr.msk.f32.mxu1 %vm217_vm0, %v212_v4  ;;  %596 = vmatprep.mubr.msk.f32.mxu0 %vm217_vm0, %v208_v5  ;;  %p662_p12 = pnand %p661_p11, %p786_p5 }
  0x1e   : > { %603 = vmatmul.mubr.msk.f32.vlgmr.msra.gmra.mxu1 %vm217_vm0, %v213_v6  ;;  %605 = vmatprep.subr.mxu1 %v722_v10 }
  0x1f   : > { %609 = vmatprep.mubr.msk.f32.mxu1 %vm723_vm1, %v722_v10  ;;  %p663_p13 = pneg %p662_p12 }
  0x20   : > { %597 = vmatmul.mubr.msk.f32.gmra.mxu0 %vm217_vm0, %v209_v7 }
  0x21   : > { %599 = vmatprep.mubr.msk.f32.mxu0 %vm217_vm0, %v210_v8 }
  0x24   : > { %600 = vmatmul.mubr.msk.f32.gmra.mxu0 %vm217_vm0, %v211_v9 }
  0xdc   : > { %v595_v11 = vpop.f32.mrf.mxu0 }
  0xde   : > { %v308_v12 = vpop.f32.mrf.mxu0  ;;  %v604_v13 = vpop.f32.mrf.mxu1 }
  0xdf   : > { %367 = vrot.lane.b32.xlu1 %v604_v13, %s724_s6 }
  0xe0   : > { %v598_v14 = vpop.f32.mrf.mxu0  ;;  %v338_v17 = vpop.f32.mrf.mxu1 }
  0xe1   : > { %351 = vrot.lane.b32.xlu0 %v598_v14, %s725_s7 }
  0xe2   : > { %v318_v15 = vpop.f32.mrf.mxu0 }
  0xe3   : > { %349 = vrot.lane.b32.xlu1 %v318_v15, %s725_s7 }
  0xe4   : > { %v601_v16 = vpop.f32.mrf.mxu0 }
  0xe5   : > { %359 = vrot.lane.b32.xlu0 %v601_v16, %s726_s8 }
  0xe6   : > { %v328_v18 = vpop.f32.mrf.mxu0 }
  0xe7   : > { %365 = vrot.lane.b32.xlu1 %v338_v17, %s724_s6  ;;  %s666_s6 = scalar_lea.vmem %s665_s5, 256 }
  0xe8   : > { %p668_p1 = scmp.lt.s32.totalorder %s666_s6, %s660_s4 }
  0xe9   : > { %357 = vrot.lane.b32.xlu0 %v328_v18, %s726_s8 }
  0xea   : > { %p669_p2 = por %p668_p1, %p667_p0 }
  0xec   : > { %p670_p3 = pnand %p669_p2, %p663_p13 }
 0x151   : > { %v368_v19 = vpop.permute.xlu1 %367 }
 0x153   : > { %v352_v20 = vpop.permute.xlu0 %351 }
 0x154   : > { %v373_v22 = vsel %vm371_vm2, %v595_v11, %v352_v20 }
 0x155   : > { %v350_v21 = vpop.permute.xlu1 %349 }
 0x156   : > { %v372_v26 = vsel %vm371_vm2, %v308_v12, %v350_v21 }
 0x157   : > { %v360_v23 = vpop.permute.xlu0 %359 }
 0x158   : > { %v375_v24 = vsel %vm217_vm0, %v373_v22, %v360_v23 }
 0x159   : > { %v378_v25 = vsel %vm376_vm3, %v375_v24, %v368_v19  ;;  %v366_v28 = vpop.permute.xlu1 %365 }
 0x15a   : > { %606 = vmatpush3.msra.mxu1 %v378_v25 }
 0x15b   : > { %v358_v27 = vpop.permute.xlu0 %357  ;;  %607 = vmatprep.subr.mxu1 %v722_v10 }
 0x15c   : > { %v374_v29 = vsel %vm217_vm0, %v372_v26, %v358_v27 }
 0x15d   : > { %v377_v31 = vsel %vm376_vm3, %v374_v29, %v366_v28 }
 0x15e   : > { %608 = vmatpush3.msra.mxu1 %v377_v31 }
 0x15f   : > { %610 = vmatmul.mubr.msk.f32.vlgmr.msra.gmra.mxu1 %vm217_vm0, %v216_v30 }
 0x21f   : > { %v448_v32 = vpop.f32.mrf.mxu1 }
 0x220   : > { %453 = vst.msk [vmem:[%s191_s25] sm:$0xff] %vm452_vm4, %v448_v32 }
 0x221   : > { %v611_v33 = vpop.f32.mrf.mxu1 }
 0x222   : > { %673 = shalt.err (!%p670_p3)
}
 0x223   : > { %s674_s7 = scalar_lea.hbm %s828_s29, 128  ;;  %s678_s10 = scalar_lea.hbm %s872_s3, 256 }
 0x224   : > { %p675_p4 = scmp.ne.s32.totalorder %s828_s29, %s674_s7  ;;  %p679_p9 = scmp.lt.s32.totalorder %s828_s29, %s872_s3 }
 0x225   : > { %p680_p10 = scmp.lt.s32.totalorder %s678_s10, %s674_s7 }
 0x226   : > { %p676_p7 = pnand %p675_p4, %p786_p5 }
 0x227   : > { %p681_p11 = por %p680_p10, %p679_p9 }
 0x228   : > { %p677_p8 = pneg %p676_p7 }
 0x22a   : > { %p682_p12 = pnand %p681_p11, %p677_p8 }
 0x22c   : > { %685 = shalt.err (!%p682_p12)
}
 0x22d   : > { %616 = dma.vmem_to_hbm [thread:$0]  (%p786_p5), %s830_s26, 128, %s828_s29, %s455_s30  }
 0x22e PF: > { %p622_p13 = scmp.ge.s32.totalorder %s720_s15, 2  ;;  %s480_s19 = sand.u32 1, %s708_s12  }
 0x22f   : > { %s481_s20 = scalar_lea.sflag [#allocation3], %s480_s19 }
 0x230   : > { %p619_p0 = pnand %p622_p13, %p790_p6 }
 0x232   : > { %p620_p1 = pneg %p619_p0 }
 0x234   : > { %703 = dma.done.wait (%p620_p1), %s481_s20, 128  }
 0x235   : > { %705 = vsyncadd (%p620_p1), %s481_s20, 4294967168  ;;  %p13_p2 = scmp.ge.s32.totalorder %s773_s18, 4   ;;  %s875_s12 = smov %s712_s13 }
 0x236   : > { %s876_s13 = smov %s716_s14  ;;  %s877_s14 = smov %s784_s21 }
 0x237   : > { %s878_s15 = smov %s773_s18  ;;  %15 = sbr.rel (!%p13_p2) target bundleno = 3 (0x3), region = 73 }
 0x23c   :  { %486 = vsyncpa [#allocation3], 1 }
 0x23d   :  { %488 = vsyncpa [#allocation3 + $0x1], 1 }

</bundles_post_ra>
